<compile_context>
chip_gen: v7x
topology: tpu7x:2x2x1
jax: 0.10.0
libtpu: 0.0.40
codegen_flags: <defaults>
</compile_context>

<pallas_src>
import functools

import jax
import jax.numpy as jnp
from jax import lax
from jax.experimental import pallas as pl
from jax.experimental.pallas import tpu as pltpu


def _round_up(a: int, b: int) -> int:
    return ((a + b - 1) // b) * b


def _vmem_cap_bytes() -> int:
    """~85% of physical per-core VMEM (leave headroom for Mosaic scratch)."""
    try:
        phys = int(pltpu.get_tpu_info().vmem_capacity_bytes)
    except Exception:
        phys = 64 << 20  # conservative default = v7x per-core VMEM
    return int(phys * 0.85)


def _pick_tm(batch: int, n_pad: int, w_bytes: int, cap: int) -> int:
    """Largest batch tile (multiple of 8, <=512) whose pipelined activation
    tiles fit next to the resident weight within the VMEM cap."""
    tm = min(512, _round_up(batch, 8))
    # x, mu, out tiles double-buffered (f32) + resident W + 2 MiB headroom.
    while tm > 8 and w_bytes + 4 * 3 * 2 * tm * n_pad + (2 << 20) > cap:
        tm = _round_up(max(8, tm // 2), 8)
    # Large batches: keep >=2 tiles so the "parallel" axis can give both
    # TensorCores work on v7x (harmless on single-TC v5e/v6e at these sizes).
    if batch >= 256 and _round_up(batch, 8) <= tm:
        tm = _round_up(pl.cdiv(_round_up(batch, 8), 2), 8)
    return tm


def _const_spec(shape, index_map, single_buffer):
    """BlockSpec for an operand whose block index is constant over the grid."""
    if single_buffer:
        return pl.BlockSpec(shape, index_map,
                            pipeline_mode=pl.Buffered(buffer_count=1))
    return pl.BlockSpec(shape, index_map)


def prepare_constants(w, mask, epsilon, alpha, weights_dtype=jnp.float32):
    """Done ONCE per parameter update (not per ODE step): apply the structural
    mask, pre-transpose, pad to lane-dense shapes, pack epsilon/alpha."""
    n = w.shape[0]
    n_pad = _round_up(max(n, 128), 128)
    wt = (w * mask).T.astype(weights_dtype)                 # (N, N), pre-transposed
    wt_p = jnp.pad(wt, ((0, n_pad - n), (0, n_pad - n)))    # (Np, Np)
    ea = jnp.stack([epsilon, alpha]).astype(jnp.float32)    # (2, N)
    ea_p = jnp.pad(ea, ((0, 0), (0, n_pad - n)))            # (2, Np)
    return wt_p, ea_p


# --------------------------------------------------------------------------
# Kernels
# --------------------------------------------------------------------------

def _ode_rhs_kernel(x_ref, wt_ref, mu_ref, ea_ref, o_ref):
    x = x_ref[...]                       # (TM, Np) f32
    w = wt_ref[...]                      # (Np, Np) masked, pre-transposed, resident
    ea = ea_ref[...]                     # (2, Np): row 0 = epsilon, row 1 = alpha
    # y = x @ (W*mask)^T; transpose already folded in host-side -> canonical
    # (TM,K)x(K,N) MXU contraction, f32 accumulation.
    y = jnp.dot(x.astype(w.dtype), w, preferred_element_type=jnp.float32)
    t = jnp.tanh(y + mu_ref[...])        # EUP tanh, f32 epilogue
    o_ref[...] = (ea[0:1, :] * t - ea[1:2, :] * x).astype(o_ref.dtype)


def _euler_fused_kernel(x0_ref, wt_ref, mu_ref, ea_ref, o_ref, *, dt):
    step = pl.program_id(1)

    @pl.when(step == 0)
    def _():
        o_ref[...] = x0_ref[...]         # state lives in the resident out block

    x = o_ref[...]
    w = wt_ref[...]
    ea = ea_ref[...]
    y = jnp.dot(x.astype(w.dtype), w, preferred_element_type=jnp.float32)
    rhs = ea[0:1, :] * jnp.tanh(y + mu_ref[...]) - ea[1:2, :] * x
    o_ref[...] = x + dt * rhs


# --------------------------------------------------------------------------
# Wrappers
# --------------------------------------------------------------------------

@functools.partial(jax.jit, static_argnames=("single_buffer_consts",))
def example_user_implemented_forward(t0, x, wt_p, mu, ea_p, *,
                                     single_buffer_consts=True):
    """Pallas TPU implementation of ExampleUserImplemented.forward.

    t0 is unused by the forward math (kept for API parity).
      x:    (B, N) float32
      wt_p: (Np, Np)         -- prepare_constants(): (W*mask)^T, padded
      mu:   (B, N) float32   -- arg_dict['mu']
      ea_p: (2, Np) float32  -- prepare_constants(): [epsilon; alpha], padded
    """
    del t0
    B, N = x.shape
    Np = wt_p.shape[0]

    cap = _vmem_cap_bytes()
    w_bufs = 1 if single_buffer_consts else 2
    w_bytes = w_bufs * Np * Np * jnp.dtype(wt_p.dtype).itemsize
    TM = _pick_tm(B, Np, w_bytes, cap)
    Bp = _round_up(B, TM)

    x_p = jnp.pad(x, ((0, Bp - B), (0, Np - N)))
    mu_p = jnp.pad(mu, ((0, Bp - B), (0, Np - N)))

    need = w_bytes + 4 * 3 * 2 * TM * Np + w_bufs * 4 * 2 * Np + (2 << 20)
    vmem_limit = int(min(max(need, 16 << 20), cap))

    out_p = pl.pallas_call(
        _ode_rhs_kernel,
        out_shape=jax.ShapeDtypeStruct((Bp, Np), jnp.float32),
        grid_spec=pltpu.PrefetchScalarGridSpec(
            num_scalar_prefetch=0,
            grid=(Bp // TM,),
            in_specs=[
                pl.BlockSpec((TM, Np), lambda i: (i, 0)),                    # x tile
                _const_spec((Np, Np), lambda i: (0, 0), single_buffer_consts),  # W^T
                pl.BlockSpec((TM, Np), lambda i: (i, 0)),                    # mu tile
                _const_spec((2, Np), lambda i: (0, 0), single_buffer_consts),   # eps/alpha
            ],
            out_specs=pl.BlockSpec((TM, Np), lambda i: (i, 0)),
        ),
        compiler_params=pltpu.CompilerParams(
            dimension_semantics=("parallel",),
            vmem_limit_bytes=vmem_limit,
        ),
    )(x_p, wt_p, mu_p, ea_p)

    return out_p[:B, :N]


@functools.partial(jax.jit,
                   static_argnames=("dt", "steps", "single_buffer_consts"))
def euler_fused(x0, wt_p, mu, ea_p, *, dt, steps, single_buffer_consts=True):
    """Whole explicit-Euler rollout (x <- x + dt * forward(x)) in ONE
    pallas_call.  Amortizes kernel launch, padding and weight DMA across
    `steps`; the ODE state stays resident in the output VMEM block."""
    B, N = x0.shape
    Np = wt_p.shape[0]

    cap = _vmem_cap_bytes()
    w_bufs = 1 if single_buffer_consts else 2
    w_bytes = w_bufs * Np * Np * jnp.dtype(wt_p.dtype).itemsize
    TM = _pick_tm(B, Np, w_bytes, cap)
    Bp = _round_up(B, TM)

    x_p = jnp.pad(x0, ((0, Bp - B), (0, Np - N)))
    mu_p = jnp.pad(mu, ((0, Bp - B), (0, Np - N)))

    need = w_bytes + 4 * 3 * 2 * TM * Np + w_bufs * 4 * 2 * Np + (2 << 20)
    vmem_limit = int(min(max(need, 16 << 20), cap))

    out_p = pl.pallas_call(
        functools.partial(_euler_fused_kernel, dt=float(dt)),
        out_shape=jax.ShapeDtypeStruct((Bp, Np), jnp.float32),
        grid_spec=pltpu.PrefetchScalarGridSpec(
            num_scalar_prefetch=0,
            grid=(Bp // TM, steps),
            in_specs=[
                pl.BlockSpec((TM, Np), lambda i, t: (i, 0)),                   # x0
                _const_spec((Np, Np), lambda i, t: (0, 0), single_buffer_consts),
                pl.BlockSpec((TM, Np), lambda i, t: (i, 0)),                   # mu
                _const_spec((2, Np), lambda i, t: (0, 0), single_buffer_consts),
            ],
            out_specs=pl.BlockSpec((TM, Np), lambda i, t: (i, 0)),
        ),
        compiler_params=pltpu.CompilerParams(
            dimension_semantics=("parallel", "arbitrary"),
            vmem_limit_bytes=vmem_limit,
        ),
    )(x_p, wt_p, mu_p, ea_p)

    return out_p[:B, :N]


# --------------------------------------------------------------------------
# Pure-JAX references
# --------------------------------------------------------------------------

def _reference_forward(x, w, mask, mu, epsilon, alpha):
    y = x @ (w * mask).T
    return epsilon[None, :] * jnp.tanh(y + mu) - alpha[None, :] * x


def _reference_euler(x, w, mask, mu, epsilon, alpha, dt, steps):
    def body(_, xc):
        return xc + dt * _reference_forward(xc, w, mask, mu, epsilon, alpha)
    return lax.fori_loop(0, steps, body, x)


if __name__ == "__main__":
    key = jax.random.PRNGKey(0)
    B, N = 8, 32  # batch, n_x

    k_x, k_w, k_m, k_mu = jax.random.split(key, 4)
    x = jax.random.normal(k_x, (B, N), dtype=jnp.float32)
    w = jax.random.normal(k_w, (N, N), dtype=jnp.float32) * 0.1
    # structural mask: deterministic 0/1 pattern
    mask = (jax.random.uniform(k_m, (N, N)) > 0.5).astype(jnp.float32)
    mu = jax.random.normal(k_mu, (B, N), dtype=jnp.float32)

    # params initialized as softplus(ones(n_x)) — matches the torch __init__
    epsilon = jnp.full((N,), jnp.log1p(jnp.exp(1.0)), dtype=jnp.float32)
    alpha = jnp.full((N,), jnp.log1p(jnp.exp(1.0)), dtype=jnp.float32)

    # Mask + transpose + pad the weight ONCE (amortized across all ODE steps).
    wt_p, ea_p = prepare_constants(w, mask, epsilon, alpha)

    single_buffer = True
    try:
        out = jax.block_until_ready(
            example_user_implemented_forward(0.0, x, wt_p, mu, ea_p,
                                             single_buffer_consts=True))
    except Exception:
        # Fallback if this JAX build rejects pl.Buffered(buffer_count=1).
        single_buffer = False
        out = jax.block_until_ready(
            example_user_implemented_forward(0.0, x, wt_p, mu, ea_p,
                                             single_buffer_consts=False))

    ref = _reference_forward(x, w, mask, mu, epsilon, alpha)
    assert out.shape == (B, N)
    assert jnp.allclose(out, ref, atol=1e-5, rtol=1e-5), "forward mismatch vs reference"

    # Fused multi-step Euler rollout (one pallas_call for the whole integration).
    dt, steps = 0.05, 16
    out_euler = jax.block_until_ready(
        euler_fused(x, wt_p, mu, ea_p, dt=dt, steps=steps,
                    single_buffer_consts=single_buffer))
    ref_euler = _reference_euler(x, w, mask, mu, epsilon, alpha, dt, steps)
    assert jnp.allclose(out_euler, ref_euler, atol=1e-4, rtol=1e-4), "euler mismatch"

    print("KERNEL_OK")
</pallas_src>

<mosaic_0001>
module attributes {stable_mosaic.version = 11 : i64} {
  func.func @_ode_rhs_kernel(%arg0: i32, %arg1: memref<8x128xf32, #tpu.memory_space<vmem>>, %arg2: memref<128x128xf32, #tpu.memory_space<vmem>>, %arg3: memref<8x128xf32, #tpu.memory_space<vmem>>, %arg4: memref<2x128xf32, #tpu.memory_space<vmem>>, %arg5: memref<8x128xf32, #tpu.memory_space<vmem>>) attributes {dimension_semantics = [#tpu.dimension_semantics<parallel>], iteration_bounds = array<i64: 1>, scalar_prefetch = 0 : i64, scratch_operands = 0 : i64, tpu.core_type = #tpu.core_type<tc>, window_params = [{transform_indices = @transform_0, window_bounds = array<i64: 8, 128>}, {pipeline_mode = #tpu.pipeline_mode<synchronous>, transform_indices = @transform_1, window_bounds = array<i64: 128, 128>}, {transform_indices = @transform_2, window_bounds = array<i64: 8, 128>}, {pipeline_mode = #tpu.pipeline_mode<synchronous>, transform_indices = @transform_3, window_bounds = array<i64: 2, 128>}, {transform_indices = @transform_4, window_bounds = array<i64: 8, 128>}]} {
    %c0 = arith.constant 0 : index
    %c0_0 = arith.constant 0 : index
    %0 = vector.load %arg1[%c0, %c0_0] : memref<8x128xf32, #tpu.memory_space<vmem>>, vector<8x128xf32>
    %c0_1 = arith.constant 0 : index
    %c0_2 = arith.constant 0 : index
    %1 = vector.load %arg2[%c0_1, %c0_2] : memref<128x128xf32, #tpu.memory_space<vmem>>, vector<128x128xf32>
    %c0_3 = arith.constant 0 : index
    %c0_4 = arith.constant 0 : index
    %2 = vector.load %arg4[%c0_3, %c0_4] : memref<2x128xf32, #tpu.memory_space<vmem>>, vector<2x128xf32>
    %cst = arith.constant dense<0.000000e+00> : vector<8x128xf32>
    %3 = tpu.matmul %0, %1, %cst {dimension_numbers = #tpu.dot_dimension_numbers<[1], [0], [0], [1], [0, 0, 1, 1], [], []>} : vector<8x128xf32>, vector<128x128xf32>, vector<8x128xf32> -> vector<8x128xf32>
    %c0_5 = arith.constant 0 : index
    %c0_6 = arith.constant 0 : index
    %4 = vector.load %arg3[%c0_5, %c0_6] : memref<8x128xf32, #tpu.memory_space<vmem>>, vector<8x128xf32>
    %5 = arith.addf %3, %4 : vector<8x128xf32>
    %6 = math.tanh %5 : vector<8x128xf32>
    %7 = vector.extract_strided_slice %2 {offsets = [0, 0], sizes = [1, 128], strides = [1, 1]} : vector<2x128xf32> to vector<1x128xf32>
    %8 = vector.broadcast %7 : vector<1x128xf32> to vector<8x128xf32>
    %9 = arith.mulf %8, %6 : vector<8x128xf32>
    %10 = vector.extract_strided_slice %2 {offsets = [1, 0], sizes = [1, 128], strides = [1, 1]} : vector<2x128xf32> to vector<1x128xf32>
    %11 = vector.broadcast %10 : vector<1x128xf32> to vector<8x128xf32>
    %12 = arith.mulf %11, %0 : vector<8x128xf32>
    %13 = arith.subf %9, %12 : vector<8x128xf32>
    %c0_7 = arith.constant 0 : index
    %c0_8 = arith.constant 0 : index
    %14 = vector.load %arg5[%c0_7, %c0_8] : memref<8x128xf32, #tpu.memory_space<vmem>>, vector<8x128xf32>
    tpu.vector_store %arg5[%c0_7, %c0_8], %13 {strides = array<i32>} : memref<8x128xf32, #tpu.memory_space<vmem>>, vector<8x128xf32>,
    return
  }
  func.func @transform_0(%arg0: i32) -> (i32, i32) {
    %c0_i32 = arith.constant 0 : i32
    %c0_i32_0 = arith.constant 0 : i32
    return %arg0, %c0_i32 : i32, i32
  }
  func.func @transform_1(%arg0: i32) -> (i32, i32) {
    %c0_i32 = arith.constant 0 : i32
    %c0_i32_0 = arith.constant 0 : i32
    %c0_i32_1 = arith.constant 0 : i32
    return %c0_i32, %c0_i32_0 : i32, i32
  }
  func.func @transform_2(%arg0: i32) -> (i32, i32) {
    %c0_i32 = arith.constant 0 : i32
    %c0_i32_0 = arith.constant 0 : i32
    return %arg0, %c0_i32 : i32, i32
  }
  func.func @transform_3(%arg0: i32) -> (i32, i32) {
    %c0_i32 = arith.constant 0 : i32
    %c0_i32_0 = arith.constant 0 : i32
    %c0_i32_1 = arith.constant 0 : i32
    return %c0_i32, %c0_i32_0 : i32, i32
  }
  func.func @transform_4(%arg0: i32) -> (i32, i32) {
    %c0_i32 = arith.constant 0 : i32
    %c0_i32_0 = arith.constant 0 : i32
    return %arg0, %c0_i32 : i32, i32
  }
}

module attributes {stable_mosaic.version = 11 : i64} {
  func.func @_ode_rhs_kernel(%arg0: i32, %arg1: memref<8x128xf32, #tpu.memory_space<vmem>>, %arg2: memref<128x128xf32, #tpu.memory_space<vmem>>, %arg3: memref<8x128xf32, #tpu.memory_space<vmem>>, %arg4: memref<2x128xf32, #tpu.memory_space<vmem>>, %arg5: memref<8x128xf32, #tpu.memory_space<vmem>>) attributes {dimension_semantics = [#tpu.dimension_semantics<parallel>], iteration_bounds = array<i64: 1>, scalar_prefetch = 0 : i64, scratch_operands = 0 : i64, tpu.core_type = #tpu.core_type<tc>, window_params = [{transform_indices = @transform_0, window_bounds = array<i64: 8, 128>}, {pipeline_mode = #tpu.pipeline_mode<synchronous>, transform_indices = @transform_1, window_bounds = array<i64: 128, 128>}, {transform_indices = @transform_2, window_bounds = array<i64: 8, 128>}, {pipeline_mode = #tpu.pipeline_mode<synchronous>, transform_indices = @transform_3, window_bounds = array<i64: 2, 128>}, {transform_indices = @transform_4, window_bounds = array<i64: 8, 128>}]} {
    %c0 = arith.constant 0 : index
    %c0_0 = arith.constant 0 : index
    %0 = vector.load %arg1[%c0, %c0_0] : memref<8x128xf32, #tpu.memory_space<vmem>>, vector<8x128xf32>
    %c0_1 = arith.constant 0 : index
    %c0_2 = arith.constant 0 : index
    %1 = vector.load %arg2[%c0_1, %c0_2] : memref<128x128xf32, #tpu.memory_space<vmem>>, vector<128x128xf32>
    %c0_3 = arith.constant 0 : index
    %c0_4 = arith.constant 0 : index
    %2 = vector.load %arg4[%c0_3, %c0_4] : memref<2x128xf32, #tpu.memory_space<vmem>>, vector<2x128xf32>
    %cst = arith.constant dense<0.000000e+00> : vector<8x128xf32>
    %3 = tpu.matmul %0, %1, %cst {dimension_numbers = #tpu.dot_dimension_numbers<[1], [0], [0], [1], [0, 0, 1, 1], [], []>} : vector<8x128xf32>, vector<128x128xf32>, vector<8x128xf32> -> vector<8x128xf32>
    %c0_5 = arith.constant 0 : index
    %c0_6 = arith.constant 0 : index
    %4 = vector.load %arg3[%c0_5, %c0_6] : memref<8x128xf32, #tpu.memory_space<vmem>>, vector<8x128xf32>
    %5 = arith.addf %3, %4 : vector<8x128xf32>
    %6 = math.tanh %5 : vector<8x128xf32>
    %7 = vector.extract_strided_slice %2 {offsets = [0, 0], sizes = [1, 128], strides = [1, 1]} : vector<2x128xf32> to vector<1x128xf32>
    %8 = vector.broadcast %7 : vector<1x128xf32> to vector<8x128xf32>
    %9 = arith.mulf %8, %6 : vector<8x128xf32>
    %10 = vector.extract_strided_slice %2 {offsets = [1, 0], sizes = [1, 128], strides = [1, 1]} : vector<2x128xf32> to vector<1x128xf32>
    %11 = vector.broadcast %10 : vector<1x128xf32> to vector<8x128xf32>
    %12 = arith.mulf %11, %0 : vector<8x128xf32>
    %13 = arith.subf %9, %12 : vector<8x128xf32>
    %c0_7 = arith.constant 0 : index
    %c0_8 = arith.constant 0 : index
    %14 = vector.load %arg5[%c0_7, %c0_8] : memref<8x128xf32, #tpu.memory_space<vmem>>, vector<8x128xf32>
    tpu.vector_store %arg5[%c0_7, %c0_8], %13 {strides = array<i32>} : memref<8x128xf32, #tpu.memory_space<vmem>>, vector<8x128xf32>,
    return
  }
  func.func @transform_0(%arg0: i32) -> (i32, i32) {
    %c0_i32 = arith.constant 0 : i32
    %c0_i32_0 = arith.constant 0 : i32
    return %arg0, %c0_i32 : i32, i32
  }
  func.func @transform_1(%arg0: i32) -> (i32, i32) {
    %c0_i32 = arith.constant 0 : i32
    %c0_i32_0 = arith.constant 0 : i32
    %c0_i32_1 = arith.constant 0 : i32
    return %c0_i32, %c0_i32_0 : i32, i32
  }
  func.func @transform_2(%arg0: i32) -> (i32, i32) {
    %c0_i32 = arith.constant 0 : i32
    %c0_i32_0 = arith.constant 0 : i32
    return %arg0, %c0_i32 : i32, i32
  }
  func.func @transform_3(%arg0: i32) -> (i32, i32) {
    %c0_i32 = arith.constant 0 : i32
    %c0_i32_0 = arith.constant 0 : i32
    %c0_i32_1 = arith.constant 0 : i32
    return %c0_i32, %c0_i32_0 : i32, i32
  }
  func.func @transform_4(%arg0: i32) -> (i32, i32) {
    %c0_i32 = arith.constant 0 : i32
    %c0_i32_0 = arith.constant 0 : i32
    return %arg0, %c0_i32 : i32, i32
  }
}

</mosaic_0001>

<bundles_post_ra>
// kernel: example_user_implemented_forward.1
= control target key start
LH: loop header
LB: loop body
LE: loop exit
PB: predicated region body
PF: predicated region fallthrough
CT: control target
= control target key end

     0   :  { %9 = vsyncpa [#allocation3], 0  ;;  %s347_s0 = inlined_call_operand.vmem [shape: f32[8,128], index: 0, kind: input, shape index: {}]   ;;  %s348_s1 = inlined_call_operand.hbm [shape: f32[128,128], index: 1, kind: input, shape index: {}]   ;;  %s349_s2 = inlined_call_operand.vmem [shape: f32[8,128], index: 2, kind: input, shape index: {}]   ;;  %s350_s3 = inlined_call_operand.vmem [shape: f32[2,128], index: 3, kind: input, shape index: {}]   ;;  %s351_s4 = inlined_call_operand.hbm [shape: f32[8,128], index: 4, kind: output, shape index: {}]  }
   0x1   :  { %10 = vsyncpa [#allocation4], 0  ;;  %s282_s15 = smov [#allocation2]   ;;  %s234_s19 = scalar_lea.hbm %s348_s1, 2048 }
   0x2   :  { %s18_s16 = sshll.u32 %s282_s15, 4  ;;  %p235_p0 = scmp.ne.s32.totalorder %s348_s1, %s234_s19  ;;  %s19_s16 = int_to_ptr.vmem [resolvable:$true] %s18_s16 }
   0x3   :  { %p238_p1 = scmp.lt.u32.totalorder %s234_s19, %s348_s1 }
   0x5   :  { %p240_p2 = pnand %p238_p1, %p235_p0 }
   0x7   :  { %243 = shalt.err (!%p240_p2)
}
   0x8   :  { %s244_s24 = scalar_lea.vmem %s19_s16, 2048  ;;  %p249_p4 = scmp.lt.s32.totalorder %s19_s16, %s19_s16 }
   0x9   :  { %p245_p3 = scmp.ne.s32.totalorder %s19_s16, %s244_s24  ;;  %p250_p5 = scmp.lt.s32.totalorder %s244_s24, %s244_s24 }
   0xb   :  { %p251_p6 = por %p250_p5, %p249_p4 }
   0xd   :  { %p252_p7 = pnand %p251_p6, %p245_p3 }
   0xf   :  { %255 = shalt.err (!%p252_p7)
}
  0x10   :  { %s283_s25 = smov 128   ;;  %s284_s26 = smov 8  }
  0x11   :  { %24 = dma.hbm_to_vmem [thread:$0]  %s348_s1, 2048, %s19_s16, [#allocation3], %s283_s25, %s283_s25, %s284_s26  }
  0x12   :  { %278 = dma.done.wait [#allocation3], 2048  }
  0x13   :  { %279 = vsyncadd [#allocation3], 4294965248  ;;  %v285_v0 = vmov 0.0|0.0   ;;  %vm286_vm0 = vmmov 0   ;;  %v287_v1 = vmov 0.0   ;;  %v33_v2 = vld [vmem:[#allocation2] sm:$0xff]  ;;  %v122_v27 = vlaneseq }
  0x14   :  { %201 = vmatprep.subr.bf16.mxu0 %v285_v0  ;;  %198 = vmatprep.mubr.msk.f32.mxu0 %vm286_vm0, %v287_v1  ;;  %v34_v3 = vld [vmem:[#allocation2 + $0x8] sm:$0xff]  ;;  %v35_v4 = vld [vmem:[#allocation2 + $0x10] sm:$0xff]  ;;  %v36_v6 = vld [vmem:[#allocation2 + $0x18] sm:$0xff] }
  0x15   :  { %v202_v5 = vpack.c.bf16 %v34_v3, %v33_v2  ;;  %v205_v7 = vpack.c.bf16 %v36_v6, %v35_v4  ;;  %v37_v8 = vld [vmem:[#allocation2 + $0x20] sm:$0xff]  ;;  %v38_v9 = vld [vmem:[#allocation2 + $0x28] sm:$0xff]  ;;  %v39_v11 = vld [vmem:[#allocation2 + $0x30] sm:$0xff]  ;;  %v123_v29 = vshrl.u32 %v122_v27, 7 }
  0x16   :  { %v208_v10 = vpack.c.bf16 %v38_v9, %v37_v8  ;;  %v40_v12 = vld [vmem:[#allocation2 + $0x38] sm:$0xff]  ;;  %v41_v14 = vld [vmem:[#allocation2 + $0x40] sm:$0xff]  ;;  %v42_v15 = vld [vmem:[#allocation2 + $0x48] sm:$0xff] }
  0x17   :  { %203 = vmatpush3.bf16.msra.mxu0 %v202_v5  ;;  %v211_v13 = vpack.c.bf16 %v40_v12, %v39_v11  ;;  %v214_v16 = vpack.c.bf16 %v42_v15, %v41_v14  ;;  %v43_v17 = vld [vmem:[#allocation2 + $0x50] sm:$0xff]  ;;  %v44_v18 = vld [vmem:[#allocation2 + $0x58] sm:$0xff]  ;;  %v45_v20 = vld [vmem:[#allocation2 + $0x60] sm:$0xff]  ;;  %v129_v33 = vsub.s32 1, %v123_v29  ;;  %v124_v35 = vsub.s32 0, %v123_v29 }
  0x18   :  { %204 = vmatprep.subr.bf16.mxu0 %v285_v0  ;;  %v217_v19 = vpack.c.bf16 %v44_v18, %v43_v17  ;;  %v46_v21 = vld [vmem:[#allocation2 + $0x68] sm:$0xff]  ;;  %v47_v23 = vld [vmem:[#allocation2 + $0x70] sm:$0xff]  ;;  %v48_v24 = vld [vmem:[#allocation2 + $0x78] sm:$0xff] }
  0x19   :  { %v220_v22 = vpack.c.bf16 %v46_v21, %v45_v20  ;;  %v223_v25 = vpack.c.bf16 %v48_v24, %v47_v23  ;;  %v32_v26 = vld [vmem:[%s347_s0] sm:$0xff]  ;;  %s288_s0 = smov [#allocation5]  }
  0x1a   :  { %v50_v28 = vld [vmem:[%s349_s2] sm:$0xff]  ;;  %s140_s8 = sshll.u32 %s288_s0, 4  ;;  %s141_s8 = int_to_ptr.vmem [resolvable:$true] %s140_s8 }
  0x1b   :  { %206 = vmatpush3.bf16.msra.mxu0 %v205_v7  ;;  %v49_v34 = vld [vmem:[%s350_s3] sm:$0x3]  ;;  %s256_s2 = scalar_lea.vmem %s141_s8, 128  ;;  %p261_p9 = scmp.lt.s32.totalorder %s141_s8, %s141_s8 }
  0x1c   :  { %207 = vmatprep.subr.bf16.mxu0 %v285_v0  ;;  %v130_v36 = vrot.slane %v49_v34, %v129_v33  ;;  %v125_v37 = vrot.slane %v49_v34, %v124_v35  ;;  %p257_p8 = scmp.ne.s32.totalorder %s141_s8, %s256_s2  ;;  %p262_p10 = scmp.lt.s32.totalorder %s256_s2, %s256_s2 }
  0x1e   :  { %v131_v38 = vmul.f32 %v130_v36, %v32_v26  ;;  %p263_p11 = por %p262_p10, %p261_p9 }
  0x1f   :  { %209 = vmatpush3.bf16.msra.mxu0 %v208_v10 }
  0x20   :  { %210 = vmatprep.subr.bf16.mxu0 %v285_v0  ;;  %p264_p12 = pnand %p263_p11, %p257_p8 }
  0x23   :  { %212 = vmatpush3.bf16.msra.mxu0 %v211_v13 }
  0x24   :  { %213 = vmatprep.subr.bf16.mxu0 %v285_v0 }
  0x27   :  { %215 = vmatpush3.bf16.msra.mxu0 %v214_v16 }
  0x28   :  { %216 = vmatprep.subr.bf16.mxu0 %v285_v0 }
  0x2b   :  { %218 = vmatpush3.bf16.msra.mxu0 %v217_v19 }
  0x2c   :  { %219 = vmatprep.subr.bf16.mxu0 %v285_v0 }
  0x2f   :  { %221 = vmatpush3.bf16.msra.mxu0 %v220_v22 }
  0x30   :  { %222 = vmatprep.subr.bf16.mxu0 %v285_v0 }
  0x33   :  { %224 = vmatpush3.bf16.msra.mxu0 %v223_v25 }
  0x36   :  { %199 = vmatmul.mubr.f32.vlgmr.msra.gmra.mrb[0].mxu0 %v32_v26 }
 0x109   :  { %v117_v30 = vpop.f32.mrb[0].mxu0 }
 0x10a   :  { %v118_v31 = vadd.f32 %v117_v30, %v50_v28  ;;  %v200_v32 = vpop.f32.mrb[1].mxu0 }
 0x10c   :  { %232 = vtanh.f32 %v118_v31 }
 0x116   :  { %v233_v39 = vpop.eup %232 }
 0x117   :  { %v126_v40 = vmul.f32 %v233_v39, %v125_v37 }
 0x119   :  { %v132_v41 = vsub.f32 %v126_v40, %v131_v38 }
 0x11b   :  { %133 = vst [vmem:[#allocation5] sm:$0xff] %v132_v41 }
 0x11c   :  { %267 = shalt.err (!%p264_p12)
}
 0x11d   :  { %s268_s10 = scalar_lea.hbm %s351_s4, 128 }
 0x11e   :  { %p269_p13 = scmp.ne.s32.totalorder %s351_s4, %s268_s10  ;;  %p272_p0 = scmp.lt.u32.totalorder %s268_s10, %s351_s4 }
 0x120   :  { %p274_p1 = pnand %p272_p0, %p269_p13 }
 0x122   :  { %277 = shalt.err (!%p274_p1)
}
 0x123   :  { %143 = dma.vmem_to_hbm [thread:$0]  %s141_s8, 128, %s351_s4, [#allocation4]  }
 0x124   :  { %280 = dma.done.wait [#allocation4], 128  }
 0x125   :  { %281 = vsyncadd [#allocation4], 4294967168 }
 0x126   :  { %147 = vsyncpa [#allocation3], 1 }
 0x127   :  { %148 = vsyncpa [#allocation4], 1 }

// kernel: example_user_implemented_forward.1
= control target key start
LH: loop header
LB: loop body
LE: loop exit
PB: predicated region body
PF: predicated region fallthrough
CT: control target
= control target key end

     0   :  { %9 = vsyncpa [#allocation3], 0  ;;  %s347_s0 = inlined_call_operand.vmem [shape: f32[8,128], index: 0, kind: input, shape index: {}]   ;;  %s348_s1 = inlined_call_operand.hbm [shape: f32[128,128], index: 1, kind: input, shape index: {}]   ;;  %s349_s2 = inlined_call_operand.vmem [shape: f32[8,128], index: 2, kind: input, shape index: {}]   ;;  %s350_s3 = inlined_call_operand.vmem [shape: f32[2,128], index: 3, kind: input, shape index: {}]   ;;  %s351_s4 = inlined_call_operand.hbm [shape: f32[8,128], index: 4, kind: output, shape index: {}]  }
   0x1   :  { %10 = vsyncpa [#allocation4], 0  ;;  %s282_s15 = smov [#allocation2]   ;;  %s234_s19 = scalar_lea.hbm %s348_s1, 2048 }
   0x2   :  { %s18_s16 = sshll.u32 %s282_s15, 4  ;;  %p235_p0 = scmp.ne.s32.totalorder %s348_s1, %s234_s19  ;;  %s19_s16 = int_to_ptr.vmem [resolvable:$true] %s18_s16 }
   0x3   :  { %p238_p1 = scmp.lt.u32.totalorder %s234_s19, %s348_s1 }
   0x5   :  { %p240_p2 = pnand %p238_p1, %p235_p0 }
   0x7   :  { %243 = shalt.err (!%p240_p2)
}
   0x8   :  { %s244_s24 = scalar_lea.vmem %s19_s16, 2048  ;;  %p249_p4 = scmp.lt.s32.totalorder %s19_s16, %s19_s16 }
   0x9   :  { %p245_p3 = scmp.ne.s32.totalorder %s19_s16, %s244_s24  ;;  %p250_p5 = scmp.lt.s32.totalorder %s244_s24, %s244_s24 }
   0xb   :  { %p251_p6 = por %p250_p5, %p249_p4 }
   0xd   :  { %p252_p7 = pnand %p251_p6, %p245_p3 }
   0xf   :  { %255 = shalt.err (!%p252_p7)
}
  0x10   :  { %s283_s25 = smov 128   ;;  %s284_s26 = smov 8  }
  0x11   :  { %24 = dma.hbm_to_vmem [thread:$0]  %s348_s1, 2048, %s19_s16, [#allocation3], %s283_s25, %s283_s25, %s284_s26  }
  0x12   :  { %278 = dma.done.wait [#allocation3], 2048  }
  0x13   :  { %279 = vsyncadd [#allocation3], 4294965248  ;;  %v285_v0 = vmov 0.0|0.0   ;;  %vm286_vm0 = vmmov 0   ;;  %v287_v1 = vmov 0.0   ;;  %v33_v2 = vld [vmem:[#allocation2] sm:$0xff]  ;;  %v122_v27 = vlaneseq }
  0x14   :  { %201 = vmatprep.subr.bf16.mxu0 %v285_v0  ;;  %198 = vmatprep.mubr.msk.f32.mxu0 %vm286_vm0, %v287_v1  ;;  %v34_v3 = vld [vmem:[#allocation2 + $0x8] sm:$0xff]  ;;  %v35_v4 = vld [vmem:[#allocation2 + $0x10] sm:$0xff]  ;;  %v36_v6 = vld [vmem:[#allocation2 + $0x18] sm:$0xff] }
  0x15   :  { %v202_v5 = vpack.c.bf16 %v34_v3, %v33_v2  ;;  %v205_v7 = vpack.c.bf16 %v36_v6, %v35_v4  ;;  %v37_v8 = vld [vmem:[#allocation2 + $0x20] sm:$0xff]  ;;  %v38_v9 = vld [vmem:[#allocation2 + $0x28] sm:$0xff]  ;;  %v39_v11 = vld [vmem:[#allocation2 + $0x30] sm:$0xff]  ;;  %v123_v29 = vshrl.u32 %v122_v27, 7 }
  0x16   :  { %v208_v10 = vpack.c.bf16 %v38_v9, %v37_v8  ;;  %v40_v12 = vld [vmem:[#allocation2 + $0x38] sm:$0xff]  ;;  %v41_v14 = vld [vmem:[#allocation2 + $0x40] sm:$0xff]  ;;  %v42_v15 = vld [vmem:[#allocation2 + $0x48] sm:$0xff] }
  0x17   :  { %203 = vmatpush3.bf16.msra.mxu0 %v202_v5  ;;  %v211_v13 = vpack.c.bf16 %v40_v12, %v39_v11  ;;  %v214_v16 = vpack.c.bf16 %v42_v15, %v41_v14  ;;  %v43_v17 = vld [vmem:[#allocation2 + $0x50] sm:$0xff]  ;;  %v44_v18 = vld [vmem:[#allocation2 + $0x58] sm:$0xff]  ;;  %v45_v20 = vld [vmem:[#allocation2 + $0x60] sm:$0xff]  ;;  %v129_v33 = vsub.s32 1, %v123_v29  ;;  %v124_v35 = vsub.s32 0, %v123_v29 }
  0x18   :  { %204 = vmatprep.subr.bf16.mxu0 %v285_v0  ;;  %v217_v19 = vpack.c.bf16 %v44_v18, %v43_v17  ;;  %v46_v21 = vld [vmem:[#allocation2 + $0x68] sm:$0xff]  ;;  %v47_v23 = vld [vmem:[#allocation2 + $0x70] sm:$0xff]  ;;  %v48_v24 = vld [vmem:[#allocation2 + $0x78] sm:$0xff] }
  0x19   :  { %v220_v22 = vpack.c.bf16 %v46_v21, %v45_v20  ;;  %v223_v25 = vpack.c.bf16 %v48_v24, %v47_v23  ;;  %v32_v26 = vld [vmem:[%s347_s0] sm:$0xff]  ;;  %s288_s0 = smov [#allocation5]  }
  0x1a   :  { %v50_v28 = vld [vmem:[%s349_s2] sm:$0xff]  ;;  %s140_s8 = sshll.u32 %s288_s0, 4  ;;  %s141_s8 = int_to_ptr.vmem [resolvable:$true] %s140_s8 }
  0x1b   :  { %206 = vmatpush3.bf16.msra.mxu0 %v205_v7  ;;  %v49_v34 = vld [vmem:[%s350_s3] sm:$0x3]  ;;  %s256_s2 = scalar_lea.vmem %s141_s8, 128  ;;  %p261_p9 = scmp.lt.s32.totalorder %s141_s8, %s141_s8 }
  0x1c   :  { %207 = vmatprep.subr.bf16.mxu0 %v285_v0  ;;  %v130_v36 = vrot.slane %v49_v34, %v129_v33  ;;  %v125_v37 = vrot.slane %v49_v34, %v124_v35  ;;  %p257_p8 = scmp.ne.s32.totalorder %s141_s8, %s256_s2  ;;  %p262_p10 = scmp.lt.s32.totalorder %s256_s2, %s256_s2 }
  0x1e   :  { %v131_v38 = vmul.f32 %v130_v36, %v32_v26  ;;  %p263_p11 = por %p262_p10, %p261_p9 }
  0x1f   :  { %209 = vmatpush3.bf16.msra.mxu0 %v208_v10 }
  0x20   :  { %210 = vmatprep.subr.bf16.mxu0 %v285_v0  ;;  %p264_p12 = pnand %p263_p11, %p257_p8 }
  0x23   :  { %212 = vmatpush3.bf16.msra.mxu0 %v211_v13 }
  0x24   :  { %213 = vmatprep.subr.bf16.mxu0 %v285_v0 }
  0x27   :  { %215 = vmatpush3.bf16.msra.mxu0 %v214_v16 }
  0x28   :  { %216 = vmatprep.subr.bf16.mxu0 %v285_v0 }
  0x2b   :  { %218 = vmatpush3.bf16.msra.mxu0 %v217_v19 }
  0x2c   :  { %219 = vmatprep.subr.bf16.mxu0 %v285_v0 }
  0x2f   :  { %221 = vmatpush3.bf16.msra.mxu0 %v220_v22 }
  0x30   :  { %222 = vmatprep.subr.bf16.mxu0 %v285_v0 }
  0x33   :  { %224 = vmatpush3.bf16.msra.mxu0 %v223_v25 }
  0x36   :  { %199 = vmatmul.mubr.f32.vlgmr.msra.gmra.mrb[0].mxu0 %v32_v26 }
 0x109   :  { %v117_v30 = vpop.f32.mrb[0].mxu0 }
 0x10a   :  { %v118_v31 = vadd.f32 %v117_v30, %v50_v28  ;;  %v200_v32 = vpop.f32.mrb[1].mxu0 }
 0x10c   :  { %232 = vtanh.f32 %v118_v31 }
 0x116   :  { %v233_v39 = vpop.eup %232 }
 0x117   :  { %v126_v40 = vmul.f32 %v233_v39, %v125_v37 }
 0x119   :  { %v132_v41 = vsub.f32 %v126_v40, %v131_v38 }
 0x11b   :  { %133 = vst [vmem:[#allocation5] sm:$0xff] %v132_v41 }
 0x11c   :  { %267 = shalt.err (!%p264_p12)
}
 0x11d   :  { %s268_s10 = scalar_lea.hbm %s351_s4, 128 }
 0x11e   :  { %p269_p13 = scmp.ne.s32.totalorder %s351_s4, %s268_s10  ;;  %p272_p0 = scmp.lt.u32.totalorder %s268_s10, %s351_s4 }
 0x120   :  { %p274_p1 = pnand %p272_p0, %p269_p13 }
 0x122   :  { %277 = shalt.err (!%p274_p1)
}
 0x123   :  { %143 = dma.vmem_to_hbm [thread:$0]  %s141_s8, 128, %s351_s4, [#allocation4]  }
 0x124   :  { %280 = dma.done.wait [#allocation4], 128  }
 0x125   :  { %281 = vsyncadd [#allocation4], 4294967168 }
 0x126   :  { %147 = vsyncpa [#allocation3], 1 }
 0x127   :  { %148 = vsyncpa [#allocation4], 1 }

</bundles_post_ra>
